<compile_context>
chip_gen: v6e
topology: v6e:2x2x1
jax: 0.10.0
libtpu: 0.0.40
codegen_flags: <defaults>
</compile_context>

<pallas_src>
import functools

import jax
import jax.numpy as jnp
from jax import lax
from jax.experimental import pallas as pl
from jax.experimental.pallas import tpu as pltpu


def _self_attention_kernel(x_ref, wqkv_ref, bqkv_ref, o_ref, *, head_dim):
    # x_ref:    (Bt*S, D)   flattened rows of this batch tile
    # wqkv_ref: (D, 3*Hp)   [Wq | Wk | Wv], each padded to a 128-lane slot
    # bqkv_ref: (1, 3*Hp)   fused bias (zero in padded lanes)
    # o_ref:    (Bt, S, Hp) lane-dense output slab (real head_dim in [:head_dim])
    Bt, S, Hp = o_ref.shape

    # ---- Fused QKV projection: one MXU matmul over all rows of this tile ----
    qkv = jnp.dot(x_ref[...], wqkv_ref[...],
                  preferred_element_type=jnp.float32)           # (Bt*S, 3Hp) f32
    qkv = qkv + bqkv_ref[...].astype(jnp.float32)
    qkv = qkv.reshape(Bt, S, 3 * Hp)

    scale = 1.0 / (float(head_dim) ** 0.5)                      # real head dim
    q = (qkv[:, :, :Hp] * scale).astype(jnp.bfloat16)           # scale folded into q
    k = qkv[:, :, Hp:2 * Hp].astype(jnp.bfloat16)
    v = qkv[:, :, 2 * Hp:].astype(jnp.bfloat16)

    # ---- scores = q @ k^T (batched, K=Hp contraction; padded lanes are zero) ----
    scores = jnp.einsum("bqh,bkh->bqk", q, k,
                        preferred_element_type=jnp.float32)     # (Bt, S, S) f32

    # Causal mask (triu, diag excluded) from batch-invariant 2-D iotas.
    row = lax.broadcasted_iota(jnp.int32, (1, S, S), 1)
    col = lax.broadcasted_iota(jnp.int32, (1, S, S), 2)
    scores = jnp.where(col > row, jnp.float32(-1e30), scores)

    # ---- Softmax in f32; normalization deferred past the PV matmul ----
    m = jnp.max(scores, axis=-1, keepdims=True)                 # (Bt, S, 1)
    p = jnp.exp(scores - m)                                     # (Bt, S, S)
    denom = jnp.sum(p, axis=-1, keepdims=True)                  # >= 1 (diagonal term)

    pv = jnp.einsum("bqk,bkh->bqh", p.astype(jnp.bfloat16), v,
                    preferred_element_type=jnp.float32)         # (Bt, S, Hp) f32
    out = pv * pl.reciprocal(denom, approx=True)                # EUP reciprocal
    o_ref[...] = out.astype(o_ref.dtype)


def _vmem_limits():
    """(per-step block budget, pallas vmem limit), derived from the actual chip."""
    try:
        cap = int(pltpu.get_tpu_info().vmem_capacity_bytes)
    except Exception:
        cap = 64 * 1024 * 1024  # conservative fallback (v7x-sized per-core VMEM)
    vmem_limit = min(cap // 2, 100 * 1024 * 1024)
    return vmem_limit // 2, vmem_limit


def _pick_block_b(B, S, D, Hp, in_itemsize, out_itemsize, budget_bytes):
    """Largest divisor of B whose per-step live set fits the VMEM budget."""
    def est(bt):
        rows = bt * S
        return (
            2 * rows * D * in_itemsize        # x tile (double-buffered)
            + 2 * bt * S * Hp * out_itemsize  # out tile (double-buffered)
            + D * 3 * Hp * in_itemsize        # fused weights (single-buffered)
            + 3 * Hp * in_itemsize            # fused bias
            + rows * 3 * Hp * 4               # qkv (f32)
            + 3 * rows * Hp * 2               # q, k, v (bf16)
            + 2 * rows * S * 4                # scores + p (f32)
            + rows * S * 2                    # p (bf16)
            + 2 * S * S * 4                   # causal-mask iotas (batch-invariant)
            + rows * Hp * 4                   # pv (f32)
            + 4 * rows * 4                    # m, denom, reciprocal, slack
        )
    best = 1
    for bt in range(1, B + 1):
        if B % bt == 0 and est(bt) <= budget_bytes:
            best = bt
    return best


def self_attention(x, wq, wk, wv, bq, bk, bv, *, block_b=None):
    """x: (B, S, D); wq/wk/wv: (D, H); bq/bk/bv: (H,). Returns (B, S, H)."""
    B, S, D = x.shape
    H = wq.shape[1]
    Hp = ((H + 127) // 128) * 128          # pad each projection to a 128-lane slot
    pad = Hp - H

    wqkv = jnp.concatenate(
        [jnp.pad(w, ((0, 0), (0, pad))) for w in (wq, wk, wv)], axis=1)   # (D, 3Hp)
    bqkv = jnp.concatenate(
        [jnp.pad(b, (0, pad)) for b in (bq, bk, bv)]).reshape(1, 3 * Hp)  # (1, 3Hp)

    budget, vmem_limit = _vmem_limits()
    if block_b is None:
        block_b = _pick_block_b(B, S, D, Hp, x.dtype.itemsize,
                                x.dtype.itemsize, budget)
        if B >= 2:                          # keep >= 2 grid steps (v7x: 2 TensorCores)
            block_b = min(block_b, B // 2)
            while B % block_b != 0:
                block_b -= 1
    assert B % block_b == 0

    x2 = x.reshape(B * S, D)                # wrapper-side flatten: kernel tile is 2-D
    kernel = functools.partial(_self_attention_kernel, head_dim=H)
    out_shape = jax.ShapeDtypeStruct((B, S, Hp), x.dtype)

    def build(single_buffer_weights):
        wkw = dict(pipeline_mode=pl.Buffered(1)) if single_buffer_weights else {}
        return pl.pallas_call(
            kernel,
            out_shape=out_shape,
            grid_spec=pltpu.PrefetchScalarGridSpec(
                num_scalar_prefetch=0,
                grid=(B // block_b,),
                in_specs=[
                    pl.BlockSpec((block_b * S, D), lambda b: (b, 0)),    # x rows
                    pl.BlockSpec((D, 3 * Hp), lambda b: (0, 0), **wkw),  # fused Wqkv
                    pl.BlockSpec((1, 3 * Hp), lambda b: (0, 0), **wkw),  # fused bias
                ],
                out_specs=pl.BlockSpec((block_b, S, Hp), lambda b: (b, 0, 0)),
            ),
            compiler_params=pltpu.CompilerParams(
                dimension_semantics=("parallel",),
                vmem_limit_bytes=vmem_limit),
        )

    try:
        out = build(single_buffer_weights=True)(x2, wqkv, bqkv)
    except Exception:
        # Fallback if this JAX build rejects pipeline_mode on pallas_call BlockSpecs.
        out = build(single_buffer_weights=False)(x2, wqkv, bqkv)

    return out[:, :, :H]                    # drop lane padding outside the kernel


def _reference(x, wq, wk, wv, bq, bk, bv):
    q = x @ wq + bq
    k = x @ wk + bk
    v = x @ wv + bv
    H = q.shape[-1]
    scores = jnp.einsum("bsh,bth->bst", q, k) / jnp.sqrt(jnp.float32(H))
    S = scores.shape[-1]
    mask = jnp.triu(jnp.ones((S, S), bool), k=1)
    scores = jnp.where(mask[None], -jnp.inf, scores)
    p = jax.nn.softmax(scores, axis=-1)
    return jnp.einsum("bst,bth->bsh", p, v)


if __name__ == "__main__":
    # Small shapes consistent with the module: batch=2, seq=8, d_model=32, head_dim=16
    B, S, D, H = 2, 8, 32, 16
    key = jax.random.PRNGKey(0)
    kx, kq, kk, kv, kbq, kbk, kbv = jax.random.split(key, 7)

    x = jax.random.normal(kx, (B, S, D), dtype=jnp.float32)

    bound = 1.0 / (D ** 0.5)                # PyTorch nn.Linear-style init
    wq = jax.random.uniform(kq, (D, H), jnp.float32, -bound, bound)
    wk = jax.random.uniform(kk, (D, H), jnp.float32, -bound, bound)
    wv = jax.random.uniform(kv, (D, H), jnp.float32, -bound, bound)
    bq = jax.random.uniform(kbq, (H,), jnp.float32, -bound, bound)
    bk = jax.random.uniform(kbk, (H,), jnp.float32, -bound, bound)
    bv = jax.random.uniform(kbv, (H,), jnp.float32, -bound, bound)

    out = jax.block_until_ready(self_attention(x, wq, wk, wv, bq, bk, bv))
    ref = _reference(x, wq, wk, wv, bq, bk, bv)

    assert out.shape == (B, S, H)
    # q/k/v/p are fed to the MXU in bf16 (f32 accumulation) and the softmax
    # denominator uses an approx EUP reciprocal, so the tolerance is looser
    # than an all-f32 comparison.
    assert jnp.allclose(out, ref, atol=2e-2, rtol=2e-2), "mismatch vs reference"

    print("KERNEL_OK")
</pallas_src>

<mosaic_0001>
module attributes {stable_mosaic.version = 11 : i64} {
  func.func @_self_attention_kernel(%arg0: i32, %arg1: memref<8x32xf32, #tpu.memory_space<vmem>>, %arg2: memref<32x384xf32, #tpu.memory_space<vmem>>, %arg3: memref<1x384xf32, #tpu.memory_space<vmem>>, %arg4: memref<1x8x128xf32, #tpu.memory_space<vmem>>) attributes {dimension_semantics = [#tpu.dimension_semantics<parallel>], iteration_bounds = array<i64: 2>, scalar_prefetch = 0 : i64, scratch_operands = 0 : i64, tpu.core_type = #tpu.core_type<tc>, window_params = [{transform_indices = @transform_0, window_bounds = array<i64: 8, 32>}, {pipeline_mode = #tpu.pipeline_mode<synchronous>, transform_indices = @transform_1, window_bounds = array<i64: 32, 384>}, {pipeline_mode = #tpu.pipeline_mode<synchronous>, transform_indices = @transform_2, window_bounds = array<i64: 1, 384>}, {transform_indices = @transform_3, window_bounds = array<i64: 1, 8, 128>}]} {
    %c0 = arith.constant 0 : index
    %c0_0 = arith.constant 0 : index
    %0 = vector.load %arg1[%c0, %c0_0] : memref<8x32xf32, #tpu.memory_space<vmem>>, vector<8x32xf32>
    %c0_1 = arith.constant 0 : index
    %c0_2 = arith.constant 0 : index
    %1 = vector.load %arg2[%c0_1, %c0_2] : memref<32x384xf32, #tpu.memory_space<vmem>>, vector<32x384xf32>
    %cst = arith.constant dense<0.000000e+00> : vector<8x384xf32>
    %2 = tpu.matmul %0, %1, %cst {dimension_numbers = #tpu.dot_dimension_numbers<[1], [0], [0], [1], [0, 0, 1, 1], [], []>} : vector<8x32xf32>, vector<32x384xf32>, vector<8x384xf32> -> vector<8x384xf32>
    %c0_3 = arith.constant 0 : index
    %c0_4 = arith.constant 0 : index
    %3 = vector.load %arg3[%c0_3, %c0_4] : memref<1x384xf32, #tpu.memory_space<vmem>>, vector<1x384xf32>
    %4 = vector.broadcast %3 : vector<1x384xf32> to vector<8x384xf32>
    %5 = arith.addf %2, %4 : vector<8x384xf32>
    %6 = vector.shape_cast %5 : vector<8x384xf32> to vector<1x8x384xf32>
    %7 = vector.extract_strided_slice %6 {offsets = [0, 0, 0], sizes = [1, 8, 128], strides = [1, 1, 1]} : vector<1x8x384xf32> to vector<1x8x128xf32>
    %cst_5 = arith.constant 2.500000e-01 : f32
    %8 = vector.broadcast %cst_5 : f32 to vector<1x8x128xf32>
    %9 = arith.mulf %7, %8 : vector<1x8x128xf32>
    %10 = arith.truncf %9 : vector<1x8x128xf32> to vector<1x8x128xbf16>
    %11 = vector.extract_strided_slice %6 {offsets = [0, 0, 128], sizes = [1, 8, 128], strides = [1, 1, 1]} : vector<1x8x384xf32> to vector<1x8x128xf32>
    %12 = arith.truncf %11 : vector<1x8x128xf32> to vector<1x8x128xbf16>
    %13 = vector.extract_strided_slice %6 {offsets = [0, 0, 256], sizes = [1, 8, 128], strides = [1, 1, 1]} : vector<1x8x384xf32> to vector<1x8x128xf32>
    %14 = arith.truncf %13 : vector<1x8x128xf32> to vector<1x8x128xbf16>
    "tpu.trace_start"() <{level = 10 : i32, message = "bqh,bkh->bqk"}> : () -> ()
    %cst_6 = arith.constant dense<0.000000e+00> : vector<1x8x8xf32>
    %15 = tpu.matmul %10, %12, %cst_6 {dimension_numbers = #tpu.dot_dimension_numbers<[2], [2], [1], [1], [0, 0, 0, 1, 1, 1], [0], [0]>} : vector<1x8x128xbf16>, vector<1x8x128xbf16>, vector<1x8x8xf32> -> vector<1x8x8xf32>
    "tpu.trace_stop"() : () -> ()
    %16 = tpu.iota {dimensions = array<i32: 1>} : vector<1x8x8xi32>
    %17 = tpu.iota {dimensions = array<i32: 2>} : vector<1x8x8xi32>
    %18 = arith.cmpi sgt, %17, %16 : vector<1x8x8xi32>
    %cst_7 = arith.constant -1.000000e+30 : f32
    %19 = vector.broadcast %cst_7 : f32 to vector<1x8x8xf32>
    %20 = arith.select %18, %19, %15 : vector<1x8x8xi1>, vector<1x8x8xf32>
    %cst_8 = arith.constant dense<0xFF800000> : vector<1x8xf32>
    %21 = vector.multi_reduction <maximumf>, %20, %cst_8 [2] : vector<1x8x8xf32> to vector<1x8xf32>
    %22 = vector.shape_cast %21 : vector<1x8xf32> to vector<1x8x1xf32>
    %23 = vector.broadcast %22 : vector<1x8x1xf32> to vector<1x8x8xf32>
    %24 = arith.subf %20, %23 : vector<1x8x8xf32>
    %25 = math.exp %24 : vector<1x8x8xf32>
    %cst_9 = arith.constant dense<0.000000e+00> : vector<1x8xf32>
    %26 = vector.multi_reduction <add>, %25, %cst_9 [2] : vector<1x8x8xf32> to vector<1x8xf32>
    %27 = vector.shape_cast %26 : vector<1x8xf32> to vector<1x8x1xf32>
    %28 = arith.truncf %25 : vector<1x8x8xf32> to vector<1x8x8xbf16>
    "tpu.trace_start"() <{level = 10 : i32, message = "bqk,bkh->bqh"}> : () -> ()
    %cst_10 = arith.constant dense<0.000000e+00> : vector<1x8x128xf32>
    %29 = tpu.matmul %28, %14, %cst_10 {dimension_numbers = #tpu.dot_dimension_numbers<[2], [1], [1], [2], [0, 0, 0, 1, 1, 2], [0], [0]>} : vector<1x8x8xbf16>, vector<1x8x128xbf16>, vector<1x8x128xf32> -> vector<1x8x128xf32>
    "tpu.trace_stop"() : () -> ()
    %30 = tpu.reciprocal %27 {approx = true} : vector<1x8x1xf32> -> vector<1x8x1xf32>
    %31 = vector.broadcast %30 : vector<1x8x1xf32> to vector<1x8x128xf32>
    %32 = arith.mulf %29, %31 : vector<1x8x128xf32>
    %c0_11 = arith.constant 0 : index
    %c0_12 = arith.constant 0 : index
    %c0_13 = arith.constant 0 : index
    %33 = vector.load %arg4[%c0_11, %c0_12, %c0_13] : memref<1x8x128xf32, #tpu.memory_space<vmem>>, vector<1x8x128xf32>
    tpu.vector_store %arg4[%c0_11, %c0_12, %c0_13], %32 {strides = array<i32>} : memref<1x8x128xf32, #tpu.memory_space<vmem>>, vector<1x8x128xf32>,
    return
  }
  func.func @transform_0(%arg0: i32) -> (i32, i32) {
    %c0_i32 = arith.constant 0 : i32
    %c0_i32_0 = arith.constant 0 : i32
    return %arg0, %c0_i32 : i32, i32
  }
  func.func @transform_1(%arg0: i32) -> (i32, i32) {
    %c0_i32 = arith.constant 0 : i32
    %c0_i32_0 = arith.constant 0 : i32
    %c0_i32_1 = arith.constant 0 : i32
    return %c0_i32, %c0_i32_0 : i32, i32
  }
  func.func @transform_2(%arg0: i32) -> (i32, i32) {
    %c0_i32 = arith.constant 0 : i32
    %c0_i32_0 = arith.constant 0 : i32
    %c0_i32_1 = arith.constant 0 : i32
    return %c0_i32, %c0_i32_0 : i32, i32
  }
  func.func @transform_3(%arg0: i32) -> (i32, i32, i32) {
    %c0_i32 = arith.constant 0 : i32
    %c0_i32_0 = arith.constant 0 : i32
    %c0_i32_1 = arith.constant 0 : i32
    return %arg0, %c0_i32, %c0_i32_0 : i32, i32, i32
  }
}

module attributes {stable_mosaic.version = 11 : i64} {
  func.func @_self_attention_kernel(%arg0: i32, %arg1: memref<8x32xf32, #tpu.memory_space<vmem>>, %arg2: memref<32x384xf32, #tpu.memory_space<vmem>>, %arg3: memref<1x384xf32, #tpu.memory_space<vmem>>, %arg4: memref<1x8x128xf32, #tpu.memory_space<vmem>>) attributes {dimension_semantics = [#tpu.dimension_semantics<parallel>], iteration_bounds = array<i64: 2>, scalar_prefetch = 0 : i64, scratch_operands = 0 : i64, tpu.core_type = #tpu.core_type<tc>, window_params = [{transform_indices = @transform_0, window_bounds = array<i64: 8, 32>}, {pipeline_mode = #tpu.pipeline_mode<synchronous>, transform_indices = @transform_1, window_bounds = array<i64: 32, 384>}, {pipeline_mode = #tpu.pipeline_mode<synchronous>, transform_indices = @transform_2, window_bounds = array<i64: 1, 384>}, {transform_indices = @transform_3, window_bounds = array<i64: 1, 8, 128>}]} {
    %c0 = arith.constant 0 : index
    %c0_0 = arith.constant 0 : index
    %0 = vector.load %arg1[%c0, %c0_0] : memref<8x32xf32, #tpu.memory_space<vmem>>, vector<8x32xf32>
    %c0_1 = arith.constant 0 : index
    %c0_2 = arith.constant 0 : index
    %1 = vector.load %arg2[%c0_1, %c0_2] : memref<32x384xf32, #tpu.memory_space<vmem>>, vector<32x384xf32>
    %cst = arith.constant dense<0.000000e+00> : vector<8x384xf32>
    %2 = tpu.matmul %0, %1, %cst {dimension_numbers = #tpu.dot_dimension_numbers<[1], [0], [0], [1], [0, 0, 1, 1], [], []>} : vector<8x32xf32>, vector<32x384xf32>, vector<8x384xf32> -> vector<8x384xf32>
    %c0_3 = arith.constant 0 : index
    %c0_4 = arith.constant 0 : index
    %3 = vector.load %arg3[%c0_3, %c0_4] : memref<1x384xf32, #tpu.memory_space<vmem>>, vector<1x384xf32>
    %4 = vector.broadcast %3 : vector<1x384xf32> to vector<8x384xf32>
    %5 = arith.addf %2, %4 : vector<8x384xf32>
    %6 = vector.shape_cast %5 : vector<8x384xf32> to vector<1x8x384xf32>
    %7 = vector.extract_strided_slice %6 {offsets = [0, 0, 0], sizes = [1, 8, 128], strides = [1, 1, 1]} : vector<1x8x384xf32> to vector<1x8x128xf32>
    %cst_5 = arith.constant 2.500000e-01 : f32
    %8 = vector.broadcast %cst_5 : f32 to vector<1x8x128xf32>
    %9 = arith.mulf %7, %8 : vector<1x8x128xf32>
    %10 = arith.truncf %9 : vector<1x8x128xf32> to vector<1x8x128xbf16>
    %11 = vector.extract_strided_slice %6 {offsets = [0, 0, 128], sizes = [1, 8, 128], strides = [1, 1, 1]} : vector<1x8x384xf32> to vector<1x8x128xf32>
    %12 = arith.truncf %11 : vector<1x8x128xf32> to vector<1x8x128xbf16>
    %13 = vector.extract_strided_slice %6 {offsets = [0, 0, 256], sizes = [1, 8, 128], strides = [1, 1, 1]} : vector<1x8x384xf32> to vector<1x8x128xf32>
    %14 = arith.truncf %13 : vector<1x8x128xf32> to vector<1x8x128xbf16>
    "tpu.trace_start"() <{level = 10 : i32, message = "bqh,bkh->bqk"}> : () -> ()
    %cst_6 = arith.constant dense<0.000000e+00> : vector<1x8x8xf32>
    %15 = tpu.matmul %10, %12, %cst_6 {dimension_numbers = #tpu.dot_dimension_numbers<[2], [2], [1], [1], [0, 0, 0, 1, 1, 1], [0], [0]>} : vector<1x8x128xbf16>, vector<1x8x128xbf16>, vector<1x8x8xf32> -> vector<1x8x8xf32>
    "tpu.trace_stop"() : () -> ()
    %16 = tpu.iota {dimensions = array<i32: 1>} : vector<1x8x8xi32>
    %17 = tpu.iota {dimensions = array<i32: 2>} : vector<1x8x8xi32>
    %18 = arith.cmpi sgt, %17, %16 : vector<1x8x8xi32>
    %cst_7 = arith.constant -1.000000e+30 : f32
    %19 = vector.broadcast %cst_7 : f32 to vector<1x8x8xf32>
    %20 = arith.select %18, %19, %15 : vector<1x8x8xi1>, vector<1x8x8xf32>
    %cst_8 = arith.constant dense<0xFF800000> : vector<1x8xf32>
    %21 = vector.multi_reduction <maximumf>, %20, %cst_8 [2] : vector<1x8x8xf32> to vector<1x8xf32>
    %22 = vector.shape_cast %21 : vector<1x8xf32> to vector<1x8x1xf32>
    %23 = vector.broadcast %22 : vector<1x8x1xf32> to vector<1x8x8xf32>
    %24 = arith.subf %20, %23 : vector<1x8x8xf32>
    %25 = math.exp %24 : vector<1x8x8xf32>
    %cst_9 = arith.constant dense<0.000000e+00> : vector<1x8xf32>
    %26 = vector.multi_reduction <add>, %25, %cst_9 [2] : vector<1x8x8xf32> to vector<1x8xf32>
    %27 = vector.shape_cast %26 : vector<1x8xf32> to vector<1x8x1xf32>
    %28 = arith.truncf %25 : vector<1x8x8xf32> to vector<1x8x8xbf16>
    "tpu.trace_start"() <{level = 10 : i32, message = "bqk,bkh->bqh"}> : () -> ()
    %cst_10 = arith.constant dense<0.000000e+00> : vector<1x8x128xf32>
    %29 = tpu.matmul %28, %14, %cst_10 {dimension_numbers = #tpu.dot_dimension_numbers<[2], [1], [1], [2], [0, 0, 0, 1, 1, 2], [0], [0]>} : vector<1x8x8xbf16>, vector<1x8x128xbf16>, vector<1x8x128xf32> -> vector<1x8x128xf32>
    "tpu.trace_stop"() : () -> ()
    %30 = tpu.reciprocal %27 {approx = true} : vector<1x8x1xf32> -> vector<1x8x1xf32>
    %31 = vector.broadcast %30 : vector<1x8x1xf32> to vector<1x8x128xf32>
    %32 = arith.mulf %29, %31 : vector<1x8x128xf32>
    %c0_11 = arith.constant 0 : index
    %c0_12 = arith.constant 0 : index
    %c0_13 = arith.constant 0 : index
    %33 = vector.load %arg4[%c0_11, %c0_12, %c0_13] : memref<1x8x128xf32, #tpu.memory_space<vmem>>, vector<1x8x128xf32>
    tpu.vector_store %arg4[%c0_11, %c0_12, %c0_13], %32 {strides = array<i32>} : memref<1x8x128xf32, #tpu.memory_space<vmem>>, vector<1x8x128xf32>,
    return
  }
  func.func @transform_0(%arg0: i32) -> (i32, i32) {
    %c0_i32 = arith.constant 0 : i32
    %c0_i32_0 = arith.constant 0 : i32
    return %arg0, %c0_i32 : i32, i32
  }
  func.func @transform_1(%arg0: i32) -> (i32, i32) {
    %c0_i32 = arith.constant 0 : i32
    %c0_i32_0 = arith.constant 0 : i32
    %c0_i32_1 = arith.constant 0 : i32
    return %c0_i32, %c0_i32_0 : i32, i32
  }
  func.func @transform_2(%arg0: i32) -> (i32, i32) {
    %c0_i32 = arith.constant 0 : i32
    %c0_i32_0 = arith.constant 0 : i32
    %c0_i32_1 = arith.constant 0 : i32
    return %c0_i32, %c0_i32_0 : i32, i32
  }
  func.func @transform_3(%arg0: i32) -> (i32, i32, i32) {
    %c0_i32 = arith.constant 0 : i32
    %c0_i32_0 = arith.constant 0 : i32
    %c0_i32_1 = arith.constant 0 : i32
    return %arg0, %c0_i32, %c0_i32_0 : i32, i32, i32
  }
}

</mosaic_0001>

<bundles_post_ra>
// kernel: tpu_custom_call.1
= control target key start
LH: loop header
LB: loop body
LE: loop exit
PB: predicated region body
PF: predicated region fallthrough
CT: control target
= control target key end

     0   :  { %8 = vsyncpa [#allocation3], 0  ;;  %s1028_s0 = inlined_call_operand.hbm [shape: f32[16,32], index: 0, kind: input, shape index: {}]   ;;  %s1029_s1 = inlined_call_operand.hbm [shape: f32[32,384], index: 1, kind: input, shape index: {}]   ;;  %s1030_s2 = inlined_call_operand.vmem [shape: f32[1,384], index: 2, kind: input, shape index: {}]   ;;  %s1031_s3 = inlined_call_operand.hbm [shape: f32[2,8,128], index: 3, kind: output, shape index: {}]  }
   0x1   :  { %10 = vsyncpa [#allocation3 + $0x1], 0 }
   0x2   :  { %11 = vsyncpa [#allocation6], 0 }
   0x3   :  { %12 = vsyncpa [#allocation4], 0 }
   0x4   :  { %14 = vsyncpa [#allocation4 + $0x1], 0  ;;  %s847_s12 = smov 0   ;;  %s849_s13 = smov 0  }
   0x5   :  { %s851_s14 = smov 0   ;;  %s853_s15 = smov 0  }
   0x6 LB: > { %s868_s16 = sadd.s32 4294967295, %s818_s15   ;;  %s582_s17 = sadd.s32 4294967294, %s818_s15   ;;  %s818_s15 = sphi %s853_s15, %s1053_s15   ;;  %s814_s14 = sphi %s851_s14, %s1052_s14   ;;  %s810_s13 = sphi %s849_s13, %s1051_s13   ;;  %s806_s12 = sphi %s847_s12, %s1050_s12  }
   0x7   : > { %p40_p0 = scmp.ne.s32.totalorder %s810_s13, %s806_s12  ;;  %p1032_p1 = scmp.eq.s32.totalorder %s868_s16, 0 }
   0x8   : > { %p112_p3 = scmp.eq.s32.totalorder %s582_s17, 1  ;;  %p583_p5 = scmp.ge.s32.totalorder %s818_s15, 1 }
   0x9   : > { %p877_p4 = por %p1032_p1, %p40_p0  ;;  %p119_p7 = scmp.lt.s32.totalorder %s818_s15, 3 }
   0xa   : > { %p882_p6 = por %p112_p3, %p40_p0  ;;  %s820_s21 = smov [#allocation5]  }
   0xb   : > { %s1036_s18 = scalar_select %p877_p4, 1, 0 }
   0xc   : > { %s1037_s19 = scalar_select %p882_p6, 1, 0 }
   0xd   : > { %p887_p8 = pnand %p583_p5, %p119_p7  ;;  %s131_s22 = sshll.u32 %s820_s21, 4  ;;  %s132_s22 = int_to_ptr.vmem [resolvable:$true] %s131_s22 }
   0xe   : > { %s901_s24 = sadd.s32 1, %s818_s15   ;;  %s27_s25 = sadd.s32 1, %s814_s14 }
   0xf   : > { %s1038_s20 = scalar_select %p887_p8, 1, 0 }
  0x10   : > { %p639_p9 = pneg %p887_p8  ;;  %s24_s26 = ssub.s32 %s818_s15, %s901_s24 }
  0x11   : > { %s707_s27 = scalar_lea.vmem %s132_s22, 1536  ;;  %p715_p5 = scmp.lt.s32.totalorder %s132_s22, %s132_s22 }
  0x12   : > { %p896_p11 = pnand %p639_p9, %p1032_p1  ;;  %p708_p13 = scmp.ne.s32.totalorder %s132_s22, %s707_s27 }
  0x13   : > { %p716_p7 = scmp.lt.s32.totalorder %s707_s27, %s707_s27 }
  0x14   : > { %p698_p12 = pneg %p896_p11 }
  0x15   : > { %p717_p10 = por %p716_p7, %p715_p5 }
  0x16   : > { %p710_p0 = pnand %p708_p13, %p698_p12 }
  0x18   : > { %p711_p3 = pneg %p710_p0 }
  0x1a   : > { %p718_p2 = pnand %p717_p10, %p711_p3 }
  0x1c   : > { %721 = shalt.err (!%p718_p2)
}
  0x1d   : > { %s821_s28 = smov 384   ;;  %s822_s29 = smov 24  }
  0x1e   : > { %642 = dma.hbm_to_vmem [thread:$0]  (!%p896_p11), %s1029_s1, 1536, %s132_s22, [#allocation6], %s821_s28, %s821_s28, %s822_s29  }
  0x1f   : > { %p25_p9 = scmp.eq.s32.totalorder %s24_s26, 0  ;;  %p34_p12 = scmp.ne.s32.totalorder %s814_s14, %s810_s13 }
  0x20   : > { %p35_p10 = scmp.eq.s32.totalorder %s818_s15, 0  ;;  %p652_p2 = scmp.lt.s32.totalorder %s818_s15, 2 }
  0x21   : > { %s918_s5 = scalar_select %p25_p9, %s814_s14, %s27_s25  }
  0x22   : > { %p36_p13 = por %p35_p10, %p34_p12  ;;  %p1040_p0 = scmp.eq.s32.totalorder %s868_s16, 1 }
  0x23   : > { %s148_s7 = sand.u32 1, %s814_s14   ;;  %s587_s8 = sshll.u32 %s818_s15, 7 }
  0x24   : > { %p922_p3 = por %p1040_p0, %p34_p12  ;;  %s586_s9 = sshll.u32 %s148_s7, 3 }
  0x25   : > { %s931_s17 = scalar_lea.hbm %s1028_s0, %s587_s8  ;;  %s152_s21 = scalar_lea.vmem [#allocation2], %s586_s9 }
  0x26   : > { %s1041_s6 = scalar_select %p922_p3, 1, 0 }
  0x27   : > { %s159_s22 = sshll.u32 %s152_s21, 4  ;;  %p933_p11 = pnand %p652_p2, %p36_p13  ;;  %s160_s22 = int_to_ptr.vmem [resolvable:$true] %s159_s22 }
  0x28   : > { %s149_s25 = scalar_lea.sflag [#allocation3], %s148_s7  ;;  %s722_s26 = scalar_lea.hbm %s931_s17, 128 }
  0x29   : > { %p723_p5 = scmp.ne.s32.totalorder %s931_s17, %s722_s26  ;;  %p724_p7 = pneg %p933_p11 }
  0x2a   : > { %s727_s29 = scalar_lea.hbm %s1028_s0, 256  ;;  %p728_p10 = scmp.lt.s32.totalorder %s931_s17, %s1028_s0 }
  0x2b   : > { %p725_p9 = pnand %p724_p7, %p723_p5  ;;  %p729_p2 = scmp.lt.s32.totalorder %s727_s29, %s722_s26 }
  0x2d   : > { %p726_p12 = pneg %p725_p9  ;;  %p730_p13 = por %p729_p2, %p728_p10 }
  0x2f   : > { %p731_p0 = pnand %p730_p13, %p726_p12 }
  0x31   : > { %734 = shalt.err (!%p731_p0)
}
  0x32   : > { %s735_s8 = scalar_lea.vmem %s160_s22, 128  ;;  %s823_s7 = smov [#allocation2]  }
  0x33   : > { %p736_p1 = scmp.ne.s32.totalorder %s160_s22, %s735_s8  ;;  %s740_s9 = sshll.u32 %s823_s7, 4  ;;  %s741_s9 = int_to_ptr.vmem [resolvable:$false] %s740_s9 }
  0x34   : > { %s742_s10 = scalar_lea.vmem %s741_s9, 256  ;;  %p743_p5 = scmp.lt.s32.totalorder %s160_s22, %s741_s9 }
  0x35   : > { %p738_p6 = pnand %p736_p1, %p724_p7  ;;  %p744_p9 = scmp.lt.s32.totalorder %s742_s10, %s735_s8 }
  0x37   : > { %p739_p3 = pneg %p738_p6  ;;  %p745_p4 = por %p744_p9, %p743_p5 }
  0x39   : > { %p746_p8 = pnand %p745_p4, %p739_p3 }
  0x3b   : > { %749 = shalt.err (!%p746_p8)
}
  0x3c   : > { %646 = dma.hbm_to_vmem [thread:$0]  (!%p933_p11), %s931_s17, 128, %s160_s22, %s149_s25  }
  0x3d   : > { %p1043_p12 = scmp.ne.s32.totalorder %s1038_s20, 0 }
  0x3e   : > { %s954_s11 = sand.u32 (!%p1043_p12), 1, %s810_s13   ;;  %p1044_p1 = scmp.ne.s32.totalorder (!%p1043_p12), %s1036_s18, 0 }
  0x3f   : > { %168 = sbr.rel (%p1043_p12) target bundleno = 850 (0x352), region = 32  ;;  %s589_s21 = sshll.u32 (!%p1043_p12), %s954_s11, 3 }
  0x40   : > { %s171_s26 = scalar_lea.sflag (!%p1043_p12), [#allocation3], %s954_s11  ;;  %s174_s27 = scalar_lea.vmem (!%p1043_p12), [#allocation2], %s589_s21 }
  0x44   : > { %793 = dma.done.wait (%p1044_p1), %s171_s26, 128  }
  0x45   : > { %795 = vsyncadd (%p1044_p1), %s171_s26, 4294967168  ;;  %p1045_p4 = scmp.eq.s32.totalorder %s868_s16, 0 }
  0x47   : > { %797 = dma.done.wait (%p1045_p4), [#allocation6], 1536   ;;  %p1046_p6 = pmov %p1045_p4 }
  0x48   : > { %v824_v0 = vmov 0.0   ;;  %v213_v1 = vld [vmem:[#allocation5 + $0x50] sm:$0xff]  ;;  %v212_v2 = vld [vmem:[#allocation5 + $0x48] sm:$0xff]  ;;  %v210_v3 = vld [vmem:[#allocation5 + $0x38] sm:$0xff]  ;;  %vm232_vm0 = vcmask 261120   ;;  %vm825_vm1 = vmmov 0   ;;  %v217_v14 = vlaneseq }
  0x49   : > { %799 = vsyncadd (%p1046_p6), [#allocation6], 4294965760  ;;  %300 = vmatprep.mubr.f32.mxu0 %v824_v0  ;;  %608 = vmatprep.subr.mxu1 %v824_v0  ;;  %v209_v4 = vld [vmem:[#allocation5 + $0x30] sm:$0xff]  ;;  %v207_v5 = vld [vmem:[#allocation5 + $0x20] sm:$0xff]  ;;  %vm427_vm3 = vcmask 64512   ;;  %vm441_vm4 = vcmask 1043456  }
  0x4a   : > { %260 = vmatprep.subr.mxu0 %v213_v1  ;;  %v206_v6 = vld [vmem:[#allocation5 + $0x18] sm:$0xff]  ;;  %v204_v7 = vld [vmem:[#allocation5 + $0x8] sm:$0xff]  ;;  %v203_v8 = vld [vmem:[#allocation5] sm:$0xff]  ;;  %616 = vmatprep.mubr.msk.f32.mxu1 %vm825_vm1, %v824_v0  ;;  %v218_v15 = vshrl.u32 %v217_v14, 7  ;;  %v424_v28 = vand.u32 127, %v217_v14  ;;  %s596_s17 = sshll.u32 %s868_s16, 7 }
  0x4b   : > { %261 = vmatpush1.msra.mxu0 %v212_v2  ;;  %v202_v9 = vld [vmem:[%s174_s27] sm:$0xff]  ;;  %v211_v11 = vld [vmem:[#allocation5 + $0x40] sm:$0xff]  ;;  %v208_v12 = vld [vmem:[#allocation5 + $0x28] sm:$0xff]  ;;  %s200_s22 = scalar_lea.vmem [#allocation7], %s589_s21  ;;  %s985_s29 = scalar_lea.hbm %s1031_s3, %s596_s17 }
  0x4c   : > { %262 = vmatprep.subr.mxu0 %v210_v3  ;;  %v214_v10 = vld [vmem:[#allocation5 + $0x58] sm:$0xff]  ;;  %v205_v13 = vld [vmem:[#allocation5 + $0x10] sm:$0xff]  ;;  %v223_v16 = vsub.s32 1, %v218_v15  ;;  %v219_v17 = vsub.s32 0, %v218_v15  ;;  %vm425_vm2 = vcmp.gt.s32.totalorder %v424_v28, %v218_v15  ;;  %v227_v35 = vsub.s32 2, %v218_v15  ;;  %s502_s23 = sshll.u32 %s200_s22, 4  ;;  %s987_s23 = int_to_ptr.vmem [resolvable:$true] %s502_s23 }
  0x4d   : > { %263 = vmatpush1.msra.mxu0 %v209_v4  ;;  %609 = vmatpush3.msra.mxu1 %v214_v10  ;;  %v215_v18 = vld [vmem:[%s1030_s2] sm:$0x7]  ;;  %s489_s16 = scalar_lea.sflag [#allocation4], %s954_s11  ;;  %s750_s30 = scalar_lea.vmem %s987_s23, 128 }
  0x4e   : > { %264 = vmatprep.subr.mxu0 %v207_v5  ;;  %610 = vmatprep.subr.mxu1 %v824_v0  ;;  %v224_v19 = vrot.slane %v215_v18, %v223_v16  ;;  %v220_v20 = vrot.slane %v215_v18, %v219_v17  ;;  %v228_v37 = vrot.slane %v215_v18, %v227_v35  ;;  %p751_p8 = scmp.ne.s32.totalorder %s987_s23, %s750_s30  ;;  %p1047_p3 = scmp.ne.s32.totalorder %s1041_s6, 0 }
  0x4f   : > { %265 = vmatpush1.msra.mxu0 %v206_v6  ;;  %611 = vmatpush3.msra.mxu1 %v211_v11  ;;  %s826_s4 = smov [#allocation7]  }
  0x50   : > { %266 = vmatprep.subr.mxu0 %v204_v7  ;;  %612 = vmatprep.subr.mxu1 %v824_v0  ;;  %p752_p11 = pnand %p751_p8, %p1047_p3  ;;  %s754_s8 = sshll.u32 %s826_s4, 4  ;;  %s755_s8 = int_to_ptr.vmem [resolvable:$false] %s754_s8 }
  0x51   : > { %267 = vmatpush1.msra.mxu0 %v203_v8  ;;  %613 = vmatpush3.msra.mxu1 %v208_v12  ;;  %s756_s7 = scalar_lea.vmem %s755_s8, 256  ;;  %p757_p10 = scmp.lt.s32.totalorder %s987_s23, %s755_s8 }
  0x52   : > { %592 = vmatmul.mubr.msk.f32.vlgmr.msra.gmra.mxu0 %vm232_vm0, %v202_v9  ;;  %619 = vmatprep.subr.bf16.mxu0 %v824_v0  ;;  %p753_p7 = pneg %p752_p11  ;;  %p758_p2 = scmp.lt.s32.totalorder %s756_s7, %s750_s30 }
  0x53   : > { %621 = vmatprep.mubr.msk.bf16.mxu0 %vm825_vm1, %v824_v0  ;;  %614 = vmatprep.subr.mxu1 %v824_v0 }
  0x54   : > { %615 = vmatpush3.msra.mxu1 %v205_v13  ;;  %p759_p13 = por %p758_p2, %p757_p10 }
  0x55   : > { %617 = vmatmul.mubr.msk.f32.vlgmr.msra.gmra.mxu1 %vm232_vm0, %v202_v9  ;;  %625 = vmatprep.subr.bf16.mxu1 %v824_v0 }
  0x56   : > { %627 = vmatprep.mubr.msk.bf16.mxu1 %vm825_vm1, %v824_v0  ;;  %p760_p0 = pnand %p759_p13, %p753_p7 }
 0x112   : > { %v302_v21 = vpop.f32.mrf.mxu0 }
 0x113   : > { %v303_v24 = vadd.f32 %v302_v21, %v220_v20 }
 0x114   : > { %v304_v22 = vpop.f32.mrf.mxu0 }
 0x115   : > { %v305_v23 = vadd.f32 %v304_v22, %v224_v19  ;;  %v377_v26 = vmul.f32 0.25, %v303_v24  ;;  %v373_v36 = vpop.f32.mrf.mxu1 }
 0x116   : > { %v374_v39 = vadd.f32 %v373_v36, %v228_v37 }
 0x117   : > { %v379_v25 = vpack.c.bf16 %v305_v23, %v305_v23  ;;  %v378_v27 = vpack.c.bf16 %v377_v26, %v377_v26  ;;  %v618_v38 = vpop.f32.mrf.mxu1 }
 0x118   : > { %v380_v40 = vpack.c.bf16 %v374_v39, %v374_v39 }
 0x119   : > { %620 = vmatpush3.bf16.xpose.msra.mxu0 %v379_v25 }
 0x11a   : > { %v443_v41 = vsel %vm441_vm4, %v380_v40, 0 }
 0x11b   : > { %626 = vmatpush3.bf16.msra.mxu1 %v443_v41 }
 0x120   : > { %622 = vmatmul.mubr.bf16.vlgmr.msra.gmra.mxu0 %v378_v27 }
 0x1e0   : > { %v415_v29 = vpop.f32.mrf.mxu0 }
 0x1e1   : > { %v426_v30 = vsel %vm425_vm2, -1e+30, %v415_v29 }
 0x1e2   : > { %v623_v31 = vpop.f32.mrf.mxu0  ;;  %v428_v32 = vsel %vm427_vm3, %v426_v30, -inf }
 0x1e3   : > { %429 = vmax.xlane.f32.xlu0 %v428_v32 }
 0x1e4   : > { %v418_v33 = vpop.f32.mrf.mxu0 }
 0x1e6   : > { %v624_v34 = vpop.f32.mrf.mxu0 }
 0x26c   : > { %v430_v42 = vpop.xlane.xlu0 %429 }
 0x26d   : > { %v431_v43 = vsub.f32 %v426_v30, %v430_v42 }
 0x26f   : > { %v432_v44 = vmul.f32 1.442695, %v431_v43 }
 0x271   : > { %692 = vpow2.f32 %v432_v44 }
 0x27e   : > { %v693_v45 = vpop.eup %692 }
 0x27f   : > { %v434_v46 = vsel %vm427_vm3, %v693_v45, 0.0  ;;  %v437_v47 = vpack.c.bf16 %v693_v45, %v693_v45 }
 0x280   : > { %435 = vadd.xlane.f32.xlu0 %v434_v46 }
 0x281   : > { %628 = vmatmul.mubr.msk.bf16.vlgmr.msra.gmra.mxu1 %vm427_vm3, %v437_v47 }
 0x309   : > { %v436_v48 = vpop.xlane.xlu0 %435 }
 0x30a   : > { %694 = vrcp.f32 %v436_v48 }
 0x317   : > { %v695_v49 = vpop.eup %694 }
 0x341   : > { %v479_v50 = vpop.f32.mrf.mxu1 }
 0x342   : > { %v486_v51 = vmul.f32 %v695_v49, %v479_v50 }
 0x343   : > { %v629_v52 = vpop.f32.mrf.mxu1 }
 0x344   : > { %487 = vst [vmem:[%s200_s22] sm:$0xff] %v486_v51 }
 0x345   : > { %v482_v53 = vpop.f32.mrf.mxu1 }
 0x346   : > { %763 = shalt.err (!%p760_p0)
}
 0x347   : > { %s764_s9 = scalar_lea.hbm %s985_s29, 128  ;;  %s768_s21 = scalar_lea.hbm %s1031_s3, 256 }
 0x348   : > { %p765_p5 = scmp.ne.s32.totalorder %s985_s29, %s764_s9  ;;  %p769_p1 = scmp.lt.s32.totalorder %s985_s29, %s1031_s3 }
 0x349   : > { %p770_p4 = scmp.lt.s32.totalorder %s768_s21, %s764_s9 }
 0x34a   : > { %p766_p9 = pnand %p765_p5, %p1047_p3 }
 0x34b   : > { %p771_p6 = por %p770_p4, %p769_p1 }
 0x34c   : > { %p767_p12 = pneg %p766_p9 }
 0x34e   : > { %p772_p8 = pnand %p771_p6, %p767_p12 }
 0x350   : > { %775 = shalt.err (!%p772_p8)
}
 0x351   : > { %637 = dma.vmem_to_hbm [thread:$0]  (%p1047_p3), %s987_s23, 128, %s985_s29, %s489_s16   ;;  %v630_v54 = vpop.f32.mrf.mxu1 }
 0x352 PF: > { %s514_s18 = sand.u32 1, %s806_s12   ;;  %p1048_p11 = scmp.ne.s32.totalorder %s1037_s19, 0 }
 0x353   : > { %p1049_p7 = scmp.ge.s32.totalorder %s818_s15, 2  ;;  %s515_s20 = scalar_lea.sflag [#allocation4], %s514_s18 }
 0x355   : > { %p648_p10 = pnand %p1049_p7, %p1048_p11 }
 0x357   : > { %p649_p2 = pneg %p648_p10 }
 0x359   : > { %801 = dma.done.wait (%p649_p2), %s515_s20, 128  }
 0x35a   : > { %803 = vsyncadd (%p649_p2), %s515_s20, 4294967168  ;;  %p17_p13 = scmp.ge.s32.totalorder %s901_s24, 4   ;;  %s1050_s12 = smov %s810_s13 }
 0x35b   : > { %s1051_s13 = smov %s814_s14  ;;  %s1052_s14 = smov %s918_s5 }
 0x35c   : > { %s1053_s15 = smov %s901_s24  ;;  %19 = sbr.rel (!%p17_p13) target bundleno = 6 (0x6), region = 81 }
 0x361   :  { %520 = vsyncpa [#allocation3], 1 }
 0x362   :  { %522 = vsyncpa [#allocation3 + $0x1], 1 }
 0x363   :  { %523 = vsyncpa [#allocation6], 1 }
 0x364   :  { %524 = vsyncpa [#allocation4], 1 }
 0x365   :  { %526 = vsyncpa [#allocation4 + $0x1], 1 }

// kernel: tpu_custom_call.1
= control target key start
LH: loop header
LB: loop body
LE: loop exit
PB: predicated region body
PF: predicated region fallthrough
CT: control target
= control target key end

     0   :  { %8 = vsyncpa [#allocation3], 0  ;;  %s1028_s0 = inlined_call_operand.hbm [shape: f32[16,32], index: 0, kind: input, shape index: {}]   ;;  %s1029_s1 = inlined_call_operand.hbm [shape: f32[32,384], index: 1, kind: input, shape index: {}]   ;;  %s1030_s2 = inlined_call_operand.vmem [shape: f32[1,384], index: 2, kind: input, shape index: {}]   ;;  %s1031_s3 = inlined_call_operand.hbm [shape: f32[2,8,128], index: 3, kind: output, shape index: {}]  }
   0x1   :  { %10 = vsyncpa [#allocation3 + $0x1], 0 }
   0x2   :  { %11 = vsyncpa [#allocation6], 0 }
   0x3   :  { %12 = vsyncpa [#allocation4], 0 }
   0x4   :  { %14 = vsyncpa [#allocation4 + $0x1], 0  ;;  %s847_s12 = smov 0   ;;  %s849_s13 = smov 0  }
   0x5   :  { %s851_s14 = smov 0   ;;  %s853_s15 = smov 0  }
   0x6 LB: > { %s868_s16 = sadd.s32 4294967295, %s818_s15   ;;  %s582_s17 = sadd.s32 4294967294, %s818_s15   ;;  %s818_s15 = sphi %s853_s15, %s1053_s15   ;;  %s814_s14 = sphi %s851_s14, %s1052_s14   ;;  %s810_s13 = sphi %s849_s13, %s1051_s13   ;;  %s806_s12 = sphi %s847_s12, %s1050_s12  }
   0x7   : > { %p40_p0 = scmp.ne.s32.totalorder %s810_s13, %s806_s12  ;;  %p1032_p1 = scmp.eq.s32.totalorder %s868_s16, 0 }
   0x8   : > { %p112_p3 = scmp.eq.s32.totalorder %s582_s17, 1  ;;  %p583_p5 = scmp.ge.s32.totalorder %s818_s15, 1 }
   0x9   : > { %p877_p4 = por %p1032_p1, %p40_p0  ;;  %p119_p7 = scmp.lt.s32.totalorder %s818_s15, 3 }
   0xa   : > { %p882_p6 = por %p112_p3, %p40_p0  ;;  %s820_s21 = smov [#allocation5]  }
   0xb   : > { %s1036_s18 = scalar_select %p877_p4, 1, 0 }
   0xc   : > { %s1037_s19 = scalar_select %p882_p6, 1, 0 }
   0xd   : > { %p887_p8 = pnand %p583_p5, %p119_p7  ;;  %s131_s22 = sshll.u32 %s820_s21, 4  ;;  %s132_s22 = int_to_ptr.vmem [resolvable:$true] %s131_s22 }
   0xe   : > { %s901_s24 = sadd.s32 1, %s818_s15   ;;  %s27_s25 = sadd.s32 1, %s814_s14 }
   0xf   : > { %s1038_s20 = scalar_select %p887_p8, 1, 0 }
  0x10   : > { %p639_p9 = pneg %p887_p8  ;;  %s24_s26 = ssub.s32 %s818_s15, %s901_s24 }
  0x11   : > { %s707_s27 = scalar_lea.vmem %s132_s22, 1536  ;;  %p715_p5 = scmp.lt.s32.totalorder %s132_s22, %s132_s22 }
  0x12   : > { %p896_p11 = pnand %p639_p9, %p1032_p1  ;;  %p708_p13 = scmp.ne.s32.totalorder %s132_s22, %s707_s27 }
  0x13   : > { %p716_p7 = scmp.lt.s32.totalorder %s707_s27, %s707_s27 }
  0x14   : > { %p698_p12 = pneg %p896_p11 }
  0x15   : > { %p717_p10 = por %p716_p7, %p715_p5 }
  0x16   : > { %p710_p0 = pnand %p708_p13, %p698_p12 }
  0x18   : > { %p711_p3 = pneg %p710_p0 }
  0x1a   : > { %p718_p2 = pnand %p717_p10, %p711_p3 }
  0x1c   : > { %721 = shalt.err (!%p718_p2)
}
  0x1d   : > { %s821_s28 = smov 384   ;;  %s822_s29 = smov 24  }
  0x1e   : > { %642 = dma.hbm_to_vmem [thread:$0]  (!%p896_p11), %s1029_s1, 1536, %s132_s22, [#allocation6], %s821_s28, %s821_s28, %s822_s29  }
  0x1f   : > { %p25_p9 = scmp.eq.s32.totalorder %s24_s26, 0  ;;  %p34_p12 = scmp.ne.s32.totalorder %s814_s14, %s810_s13 }
  0x20   : > { %p35_p10 = scmp.eq.s32.totalorder %s818_s15, 0  ;;  %p652_p2 = scmp.lt.s32.totalorder %s818_s15, 2 }
  0x21   : > { %s918_s5 = scalar_select %p25_p9, %s814_s14, %s27_s25  }
  0x22   : > { %p36_p13 = por %p35_p10, %p34_p12  ;;  %p1040_p0 = scmp.eq.s32.totalorder %s868_s16, 1 }
  0x23   : > { %s148_s7 = sand.u32 1, %s814_s14   ;;  %s587_s8 = sshll.u32 %s818_s15, 7 }
  0x24   : > { %p922_p3 = por %p1040_p0, %p34_p12  ;;  %s586_s9 = sshll.u32 %s148_s7, 3 }
  0x25   : > { %s931_s17 = scalar_lea.hbm %s1028_s0, %s587_s8  ;;  %s152_s21 = scalar_lea.vmem [#allocation2], %s586_s9 }
  0x26   : > { %s1041_s6 = scalar_select %p922_p3, 1, 0 }
  0x27   : > { %s159_s22 = sshll.u32 %s152_s21, 4  ;;  %p933_p11 = pnand %p652_p2, %p36_p13  ;;  %s160_s22 = int_to_ptr.vmem [resolvable:$true] %s159_s22 }
  0x28   : > { %s149_s25 = scalar_lea.sflag [#allocation3], %s148_s7  ;;  %s722_s26 = scalar_lea.hbm %s931_s17, 128 }
  0x29   : > { %p723_p5 = scmp.ne.s32.totalorder %s931_s17, %s722_s26  ;;  %p724_p7 = pneg %p933_p11 }
  0x2a   : > { %s727_s29 = scalar_lea.hbm %s1028_s0, 256  ;;  %p728_p10 = scmp.lt.s32.totalorder %s931_s17, %s1028_s0 }
  0x2b   : > { %p725_p9 = pnand %p724_p7, %p723_p5  ;;  %p729_p2 = scmp.lt.s32.totalorder %s727_s29, %s722_s26 }
  0x2d   : > { %p726_p12 = pneg %p725_p9  ;;  %p730_p13 = por %p729_p2, %p728_p10 }
  0x2f   : > { %p731_p0 = pnand %p730_p13, %p726_p12 }
  0x31   : > { %734 = shalt.err (!%p731_p0)
}
  0x32   : > { %s735_s8 = scalar_lea.vmem %s160_s22, 128  ;;  %s823_s7 = smov [#allocation2]  }
  0x33   : > { %p736_p1 = scmp.ne.s32.totalorder %s160_s22, %s735_s8  ;;  %s740_s9 = sshll.u32 %s823_s7, 4  ;;  %s741_s9 = int_to_ptr.vmem [resolvable:$false] %s740_s9 }
  0x34   : > { %s742_s10 = scalar_lea.vmem %s741_s9, 256  ;;  %p743_p5 = scmp.lt.s32.totalorder %s160_s22, %s741_s9 }
  0x35   : > { %p738_p6 = pnand %p736_p1, %p724_p7  ;;  %p744_p9 = scmp.lt.s32.totalorder %s742_s10, %s735_s8 }
  0x37   : > { %p739_p3 = pneg %p738_p6  ;;  %p745_p4 = por %p744_p9, %p743_p5 }
  0x39   : > { %p746_p8 = pnand %p745_p4, %p739_p3 }
  0x3b   : > { %749 = shalt.err (!%p746_p8)
}
  0x3c   : > { %646 = dma.hbm_to_vmem [thread:$0]  (!%p933_p11), %s931_s17, 128, %s160_s22, %s149_s25  }
  0x3d   : > { %p1043_p12 = scmp.ne.s32.totalorder %s1038_s20, 0 }
  0x3e   : > { %s954_s11 = sand.u32 (!%p1043_p12), 1, %s810_s13   ;;  %p1044_p1 = scmp.ne.s32.totalorder (!%p1043_p12), %s1036_s18, 0 }
  0x3f   : > { %168 = sbr.rel (%p1043_p12) target bundleno = 850 (0x352), region = 32  ;;  %s589_s21 = sshll.u32 (!%p1043_p12), %s954_s11, 3 }
  0x40   : > { %s171_s26 = scalar_lea.sflag (!%p1043_p12), [#allocation3], %s954_s11  ;;  %s174_s27 = scalar_lea.vmem (!%p1043_p12), [#allocation2], %s589_s21 }
  0x44   : > { %793 = dma.done.wait (%p1044_p1), %s171_s26, 128  }
  0x45   : > { %795 = vsyncadd (%p1044_p1), %s171_s26, 4294967168  ;;  %p1045_p4 = scmp.eq.s32.totalorder %s868_s16, 0 }
  0x47   : > { %797 = dma.done.wait (%p1045_p4), [#allocation6], 1536   ;;  %p1046_p6 = pmov %p1045_p4 }
  0x48   : > { %v824_v0 = vmov 0.0   ;;  %v213_v1 = vld [vmem:[#allocation5 + $0x50] sm:$0xff]  ;;  %v212_v2 = vld [vmem:[#allocation5 + $0x48] sm:$0xff]  ;;  %v210_v3 = vld [vmem:[#allocation5 + $0x38] sm:$0xff]  ;;  %vm232_vm0 = vcmask 261120   ;;  %vm825_vm1 = vmmov 0   ;;  %v217_v14 = vlaneseq }
  0x49   : > { %799 = vsyncadd (%p1046_p6), [#allocation6], 4294965760  ;;  %300 = vmatprep.mubr.f32.mxu0 %v824_v0  ;;  %608 = vmatprep.subr.mxu1 %v824_v0  ;;  %v209_v4 = vld [vmem:[#allocation5 + $0x30] sm:$0xff]  ;;  %v207_v5 = vld [vmem:[#allocation5 + $0x20] sm:$0xff]  ;;  %vm427_vm3 = vcmask 64512   ;;  %vm441_vm4 = vcmask 1043456  }
  0x4a   : > { %260 = vmatprep.subr.mxu0 %v213_v1  ;;  %v206_v6 = vld [vmem:[#allocation5 + $0x18] sm:$0xff]  ;;  %v204_v7 = vld [vmem:[#allocation5 + $0x8] sm:$0xff]  ;;  %v203_v8 = vld [vmem:[#allocation5] sm:$0xff]  ;;  %616 = vmatprep.mubr.msk.f32.mxu1 %vm825_vm1, %v824_v0  ;;  %v218_v15 = vshrl.u32 %v217_v14, 7  ;;  %v424_v28 = vand.u32 127, %v217_v14  ;;  %s596_s17 = sshll.u32 %s868_s16, 7 }
  0x4b   : > { %261 = vmatpush1.msra.mxu0 %v212_v2  ;;  %v202_v9 = vld [vmem:[%s174_s27] sm:$0xff]  ;;  %v211_v11 = vld [vmem:[#allocation5 + $0x40] sm:$0xff]  ;;  %v208_v12 = vld [vmem:[#allocation5 + $0x28] sm:$0xff]  ;;  %s200_s22 = scalar_lea.vmem [#allocation7], %s589_s21  ;;  %s985_s29 = scalar_lea.hbm %s1031_s3, %s596_s17 }
  0x4c   : > { %262 = vmatprep.subr.mxu0 %v210_v3  ;;  %v214_v10 = vld [vmem:[#allocation5 + $0x58] sm:$0xff]  ;;  %v205_v13 = vld [vmem:[#allocation5 + $0x10] sm:$0xff]  ;;  %v223_v16 = vsub.s32 1, %v218_v15  ;;  %v219_v17 = vsub.s32 0, %v218_v15  ;;  %vm425_vm2 = vcmp.gt.s32.totalorder %v424_v28, %v218_v15  ;;  %v227_v35 = vsub.s32 2, %v218_v15  ;;  %s502_s23 = sshll.u32 %s200_s22, 4  ;;  %s987_s23 = int_to_ptr.vmem [resolvable:$true] %s502_s23 }
  0x4d   : > { %263 = vmatpush1.msra.mxu0 %v209_v4  ;;  %609 = vmatpush3.msra.mxu1 %v214_v10  ;;  %v215_v18 = vld [vmem:[%s1030_s2] sm:$0x7]  ;;  %s489_s16 = scalar_lea.sflag [#allocation4], %s954_s11  ;;  %s750_s30 = scalar_lea.vmem %s987_s23, 128 }
  0x4e   : > { %264 = vmatprep.subr.mxu0 %v207_v5  ;;  %610 = vmatprep.subr.mxu1 %v824_v0  ;;  %v224_v19 = vrot.slane %v215_v18, %v223_v16  ;;  %v220_v20 = vrot.slane %v215_v18, %v219_v17  ;;  %v228_v37 = vrot.slane %v215_v18, %v227_v35  ;;  %p751_p8 = scmp.ne.s32.totalorder %s987_s23, %s750_s30  ;;  %p1047_p3 = scmp.ne.s32.totalorder %s1041_s6, 0 }
  0x4f   : > { %265 = vmatpush1.msra.mxu0 %v206_v6  ;;  %611 = vmatpush3.msra.mxu1 %v211_v11  ;;  %s826_s4 = smov [#allocation7]  }
  0x50   : > { %266 = vmatprep.subr.mxu0 %v204_v7  ;;  %612 = vmatprep.subr.mxu1 %v824_v0  ;;  %p752_p11 = pnand %p751_p8, %p1047_p3  ;;  %s754_s8 = sshll.u32 %s826_s4, 4  ;;  %s755_s8 = int_to_ptr.vmem [resolvable:$false] %s754_s8 }
  0x51   : > { %267 = vmatpush1.msra.mxu0 %v203_v8  ;;  %613 = vmatpush3.msra.mxu1 %v208_v12  ;;  %s756_s7 = scalar_lea.vmem %s755_s8, 256  ;;  %p757_p10 = scmp.lt.s32.totalorder %s987_s23, %s755_s8 }
  0x52   : > { %592 = vmatmul.mubr.msk.f32.vlgmr.msra.gmra.mxu0 %vm232_vm0, %v202_v9  ;;  %619 = vmatprep.subr.bf16.mxu0 %v824_v0  ;;  %p753_p7 = pneg %p752_p11  ;;  %p758_p2 = scmp.lt.s32.totalorder %s756_s7, %s750_s30 }
  0x53   : > { %621 = vmatprep.mubr.msk.bf16.mxu0 %vm825_vm1, %v824_v0  ;;  %614 = vmatprep.subr.mxu1 %v824_v0 }
  0x54   : > { %615 = vmatpush3.msra.mxu1 %v205_v13  ;;  %p759_p13 = por %p758_p2, %p757_p10 }
  0x55   : > { %617 = vmatmul.mubr.msk.f32.vlgmr.msra.gmra.mxu1 %vm232_vm0, %v202_v9  ;;  %625 = vmatprep.subr.bf16.mxu1 %v824_v0 }
  0x56   : > { %627 = vmatprep.mubr.msk.bf16.mxu1 %vm825_vm1, %v824_v0  ;;  %p760_p0 = pnand %p759_p13, %p753_p7 }
 0x112   : > { %v302_v21 = vpop.f32.mrf.mxu0 }
 0x113   : > { %v303_v24 = vadd.f32 %v302_v21, %v220_v20 }
 0x114   : > { %v304_v22 = vpop.f32.mrf.mxu0 }
 0x115   : > { %v305_v23 = vadd.f32 %v304_v22, %v224_v19  ;;  %v377_v26 = vmul.f32 0.25, %v303_v24  ;;  %v373_v36 = vpop.f32.mrf.mxu1 }
 0x116   : > { %v374_v39 = vadd.f32 %v373_v36, %v228_v37 }
 0x117   : > { %v379_v25 = vpack.c.bf16 %v305_v23, %v305_v23  ;;  %v378_v27 = vpack.c.bf16 %v377_v26, %v377_v26  ;;  %v618_v38 = vpop.f32.mrf.mxu1 }
 0x118   : > { %v380_v40 = vpack.c.bf16 %v374_v39, %v374_v39 }
 0x119   : > { %620 = vmatpush3.bf16.xpose.msra.mxu0 %v379_v25 }
 0x11a   : > { %v443_v41 = vsel %vm441_vm4, %v380_v40, 0 }
 0x11b   : > { %626 = vmatpush3.bf16.msra.mxu1 %v443_v41 }
 0x120   : > { %622 = vmatmul.mubr.bf16.vlgmr.msra.gmra.mxu0 %v378_v27 }
 0x1e0   : > { %v415_v29 = vpop.f32.mrf.mxu0 }
 0x1e1   : > { %v426_v30 = vsel %vm425_vm2, -1e+30, %v415_v29 }
 0x1e2   : > { %v623_v31 = vpop.f32.mrf.mxu0  ;;  %v428_v32 = vsel %vm427_vm3, %v426_v30, -inf }
 0x1e3   : > { %429 = vmax.xlane.f32.xlu0 %v428_v32 }
 0x1e4   : > { %v418_v33 = vpop.f32.mrf.mxu0 }
 0x1e6   : > { %v624_v34 = vpop.f32.mrf.mxu0 }
 0x26c   : > { %v430_v42 = vpop.xlane.xlu0 %429 }
 0x26d   : > { %v431_v43 = vsub.f32 %v426_v30, %v430_v42 }
 0x26f   : > { %v432_v44 = vmul.f32 1.442695, %v431_v43 }
 0x271   : > { %692 = vpow2.f32 %v432_v44 }
 0x27e   : > { %v693_v45 = vpop.eup %692 }
 0x27f   : > { %v434_v46 = vsel %vm427_vm3, %v693_v45, 0.0  ;;  %v437_v47 = vpack.c.bf16 %v693_v45, %v693_v45 }
 0x280   : > { %435 = vadd.xlane.f32.xlu0 %v434_v46 }
 0x281   : > { %628 = vmatmul.mubr.msk.bf16.vlgmr.msra.gmra.mxu1 %vm427_vm3, %v437_v47 }
 0x309   : > { %v436_v48 = vpop.xlane.xlu0 %435 }
 0x30a   : > { %694 = vrcp.f32 %v436_v48 }
 0x317   : > { %v695_v49 = vpop.eup %694 }
 0x341   : > { %v479_v50 = vpop.f32.mrf.mxu1 }
 0x342   : > { %v486_v51 = vmul.f32 %v695_v49, %v479_v50 }
 0x343   : > { %v629_v52 = vpop.f32.mrf.mxu1 }
 0x344   : > { %487 = vst [vmem:[%s200_s22] sm:$0xff] %v486_v51 }
 0x345   : > { %v482_v53 = vpop.f32.mrf.mxu1 }
 0x346   : > { %763 = shalt.err (!%p760_p0)
}
 0x347   : > { %s764_s9 = scalar_lea.hbm %s985_s29, 128  ;;  %s768_s21 = scalar_lea.hbm %s1031_s3, 256 }
 0x348   : > { %p765_p5 = scmp.ne.s32.totalorder %s985_s29, %s764_s9  ;;  %p769_p1 = scmp.lt.s32.totalorder %s985_s29, %s1031_s3 }
 0x349   : > { %p770_p4 = scmp.lt.s32.totalorder %s768_s21, %s764_s9 }
 0x34a   : > { %p766_p9 = pnand %p765_p5, %p1047_p3 }
 0x34b   : > { %p771_p6 = por %p770_p4, %p769_p1 }
 0x34c   : > { %p767_p12 = pneg %p766_p9 }
 0x34e   : > { %p772_p8 = pnand %p771_p6, %p767_p12 }
 0x350   : > { %775 = shalt.err (!%p772_p8)
}
 0x351   : > { %637 = dma.vmem_to_hbm [thread:$0]  (%p1047_p3), %s987_s23, 128, %s985_s29, %s489_s16   ;;  %v630_v54 = vpop.f32.mrf.mxu1 }
 0x352 PF: > { %s514_s18 = sand.u32 1, %s806_s12   ;;  %p1048_p11 = scmp.ne.s32.totalorder %s1037_s19, 0 }
 0x353   : > { %p1049_p7 = scmp.ge.s32.totalorder %s818_s15, 2  ;;  %s515_s20 = scalar_lea.sflag [#allocation4], %s514_s18 }
 0x355   : > { %p648_p10 = pnand %p1049_p7, %p1048_p11 }
 0x357   : > { %p649_p2 = pneg %p648_p10 }
 0x359   : > { %801 = dma.done.wait (%p649_p2), %s515_s20, 128  }
 0x35a   : > { %803 = vsyncadd (%p649_p2), %s515_s20, 4294967168  ;;  %p17_p13 = scmp.ge.s32.totalorder %s901_s24, 4   ;;  %s1050_s12 = smov %s810_s13 }
 0x35b   : > { %s1051_s13 = smov %s814_s14  ;;  %s1052_s14 = smov %s918_s5 }
 0x35c   : > { %s1053_s15 = smov %s901_s24  ;;  %19 = sbr.rel (!%p17_p13) target bundleno = 6 (0x6), region = 81 }
 0x361   :  { %520 = vsyncpa [#allocation3], 1 }
 0x362   :  { %522 = vsyncpa [#allocation3 + $0x1], 1 }
 0x363   :  { %523 = vsyncpa [#allocation6], 1 }
 0x364   :  { %524 = vsyncpa [#allocation4], 1 }
 0x365   :  { %526 = vsyncpa [#allocation4 + $0x1], 1 }

</bundles_post_ra>
